<compile_context>
chip_gen: v7x
topology: tpu7x:2x2x1
jax: 0.10.0
libtpu: 0.0.40
codegen_flags: <defaults>
</compile_context>

<pallas_src>
import functools
import math

import numpy as np
import jax
import jax.numpy as jnp
from jax import lax
from jax.experimental import pallas as pl
from jax.experimental.pallas import tpu as pltpu


def _round_up(a, m):
    return -(-a // m) * m


def _gemm_kernel(x_ref, w_ref, o_ref):
    """One fat GEMM per (batch, pixel-row-tile).

    x_ref : (TP, KDp)   im2col rows (taps*Cin + ones column, zero padded)
    w_ref : (KDp, CB)   phase-folded weights with bias row
    o_ref : (TP, CB)    pixel-major output tile (phase*Cout channels)

    Accumulation stays in the MXU / vector registers; single store per tile.
    """
    o_ref[...] = jnp.dot(x_ref[...], w_ref[...],
                         preferred_element_type=jnp.float32).astype(o_ref.dtype)


def _phase_taps(K, s, p):
    """Sub-pixel decomposition of one spatial axis of a transposed conv.

    Returns (L, M, taps): left pad L of the un-dilated input, unified window
    length M, and taps[r] = list of (m, k) pairs for output phase r, meaning
    y[s*i + r] += x_pad[i + m] * w[k].
    """
    q = [(r + p) % s for r in range(s)]
    t = [(r + p) // s for r in range(s)]
    kk = [max(0, -(-(K - q[r]) // s)) if q[r] < K else 0 for r in range(s)]
    L = max([kk[r] - 1 - t[r] for r in range(s)] + [0])
    off = [L + t[r] - kk[r] + 1 for r in range(s)]
    M = max([off[r] + kk[r] for r in range(s) if kk[r] > 0] + [1])
    taps = []
    for r in range(s):
        taps_r = []
        for m in range(off[r], off[r] + kk[r]):
            taps_r.append((m, q[r] + s * (t[r] + L - m)))
        taps.append(taps_r)
    return L, M, taps


def equal_conv_transpose2d(x_nchw, weight, bias=None, *, stride=1, padding=0,
                           block_rows=None, compute_dtype=jnp.float32):
    """F.conv_transpose2d(x, weight * scale, bias, stride, padding), NCHW."""
    Cin, Cout, K, K2 = weight.shape
    assert K == K2, "square kernels only"
    s, p = int(stride), int(padding)
    N, Cin_x, H, W = x_nchw.shape
    assert Cin_x == Cin
    if bias is None:
        bias = jnp.zeros((Cout,), jnp.float32)
    scale = 1.0 / math.sqrt(Cin * K * K)

    Hout = (H - 1) * s - 2 * p + K
    Wout = (W - 1) * s - 2 * p + K
    assert Hout >= 1 and Wout >= 1

    # Same 1-D geometry for H and W (square kernel, same stride/padding).
    L, M, taps = _phase_taps(K, s, p)
    Houtp = -(-Hout // s)            # phase-rows
    Woutp = -(-Wout // s)            # phase-cols
    P = Houtp * Woutp

    # Single pad pass on the small, un-dilated input (no zero-insertion).
    Hpad = max(Houtp + M - 1, H + L)
    Wpad = max(Woutp + M - 1, W + L)
    x = jnp.transpose(x_nchw, (0, 2, 3, 1))                         # NHWC
    x = jnp.pad(x, ((0, 0), (L, Hpad - H - L), (L, Wpad - W - L), (0, 0)))

    # im2col on the UN-dilated input: Cin is tiny, so a direct per-tap conv
    # would starve the MXU; fold all M*M taps + Cin into one contraction axis.
    patches = jnp.stack(
        [x[:, m:m + Houtp, mm:mm + Woutp, :] for m in range(M) for mm in range(M)],
        axis=3)                                       # (N, Houtp, Woutp, M*M, Cin)
    KD = M * M * Cin
    lhs = patches.reshape(N, P, KD)
    # Ones column -> bias folded into the GEMM (no epilogue add in kernel).
    lhs = jnp.concatenate([lhs, jnp.ones((N, P, 1), lhs.dtype)], axis=-1)
    KDp = _round_up(KD + 1, 8)
    lhs = jnp.pad(lhs, ((0, 0), (0, 0), (0, KDp - (KD + 1))))

    # Phase-folded weight matrix, built with one vectorized gather + 0/1 mask
    # (exact; no chained scatters, no matmul-precision dependence).
    khm = np.zeros((M, s), np.int32)
    mskh = np.zeros((M, s), np.float32)
    for r in range(s):
        for (m, kh) in taps[r]:
            khm[m, r] = kh
            mskh[m, r] = 1.0
    idx = jnp.asarray(khm)
    msk = jnp.asarray(mskh)
    w_s = weight.astype(jnp.float32) * scale                        # (Cin,Cout,K,K)
    w_g = w_s[:, :, idx[:, :, None, None], idx[None, None, :, :]]   # (Ci,Co,M,s,M,s)
    w_g = w_g * (msk[:, :, None, None] * msk[None, None, :, :])[None, None]
    wbig = jnp.transpose(w_g, (2, 4, 0, 3, 5, 1))                   # (M,M,Ci,s,s,Co)
    CoutBig = s * s * Cout
    w_mat = wbig.reshape(KD, CoutBig)
    b_row = jnp.tile(bias.astype(jnp.float32), s * s).reshape(1, CoutBig)
    w_mat = jnp.concatenate([w_mat, b_row], axis=0)                 # (KD+1, CoutBig)
    # Lane-pad the folded output-channel axis only when it is already large;
    # for small CoutBig the 4x HBM-write inflation outweighs unmasked stores.
    CB = CoutBig if CoutBig < 128 else _round_up(CoutBig, 128)
    w_mat = jnp.pad(w_mat, ((0, KDp - (KD + 1)), (0, CB - CoutBig)))

    lhs = lhs.astype(compute_dtype)
    w_mat = w_mat.astype(compute_dtype)

    # Row tiling: TP output-pixel rows per grid step, always a multiple of 8.
    if block_rows is None:
        block_rows = min(512, _round_up(P, 8))
        if N == 1 and P > 8:
            # keep >= 2 grid steps so both v7x TensorCores get work
            block_rows = min(block_rows, _round_up(-(-P // 2), 8))
    TP = min(_round_up(int(block_rows), 8), _round_up(P, 8))
    Ppad = _round_up(P, TP)
    nP = Ppad // TP
    if Ppad > P:
        lhs = jnp.pad(lhs, ((0, 0), (0, Ppad - P), (0, 0)))

    # Right-sized VMEM budget: double-buffered LHS/out tiles + weights + margin.
    opb = 4 if compute_dtype == jnp.float32 else 2
    vmem = (2 * TP * KDp * opb) + (2 * KDp * CB * opb) + (2 * TP * CB * 4) + (2 << 20)
    vmem = int(min(max(vmem, 4 << 20), 64 << 20))

    out = pl.pallas_call(
        _gemm_kernel,
        out_shape=jax.ShapeDtypeStruct((N, Ppad, CB), jnp.float32),
        grid_spec=pltpu.PrefetchScalarGridSpec(
            num_scalar_prefetch=0,
            grid=(N, nP),
            in_specs=[
                pl.BlockSpec((None, TP, KDp), lambda n, q: (n, q, 0)),
                # TODO(synk): pipeline_mode=pl.Buffered(1) would single-buffer
                # this grid-invariant slab; left at the default to avoid
                # relying on a buffer_count=1 lowering path (slab is tiny here).
                pl.BlockSpec((KDp, CB), lambda n, q: (0, 0)),
            ],
            out_specs=pl.BlockSpec((None, TP, CB), lambda n, q: (n, q, 0)),
        ),
        compiler_params=pltpu.CompilerParams(
            dimension_semantics=("parallel", "parallel"),
            vmem_limit_bytes=vmem),
    )(lhs, w_mat)

    # Depth-to-space (phase interleave) + NHWC->NCHW fused into ONE transpose,
    # then crop the phase-rounded extent down to (Hout, Wout).
    y = out[:, :P, :CoutBig].reshape(N, Houtp, Woutp, s, s, Cout)
    y = jnp.transpose(y, (0, 5, 1, 3, 2, 4))
    y = y.reshape(N, Cout, Houtp * s, Woutp * s)
    return y[:, :, :Hout, :Wout]


if __name__ == "__main__":
    key = jax.random.PRNGKey(0)
    k1, k2, k3, k4, k5 = jax.random.split(key, 5)

    def run_and_check(x, weight, bias, stride, padding):
        N, Cin, H, W = x.shape
        _, Cout, K, _ = weight.shape
        out = equal_conv_transpose2d(x, weight, bias, stride=stride,
                                     padding=padding)
        out = jax.block_until_ready(out)
        # Reference: F.conv_transpose2d expressed with lax.conv_general_dilated.
        scale = 1.0 / math.sqrt(Cin * K * K)
        w_ref = jnp.transpose(weight, (1, 0, 2, 3))[:, :, ::-1, ::-1] * scale
        pad = K - 1 - padding
        ref = lax.conv_general_dilated(
            x, w_ref, window_strides=(1, 1),
            padding=[(pad, pad), (pad, pad)],
            lhs_dilation=(stride, stride),
            dimension_numbers=("NCHW", "OIHW", "NCHW"),
            precision=lax.Precision.HIGHEST,
        ) + bias.reshape(1, Cout, 1, 1)
        Hout = (H - 1) * stride - 2 * padding + K
        Wout = (W - 1) * stride - 2 * padding + K
        assert out.shape == (N, Cout, Hout, Wout), out.shape
        err = float(jnp.max(jnp.abs(out - ref)))
        assert jnp.allclose(out, ref, atol=5e-3, rtol=5e-3), err

    # Module-typical upsampling config: in=4, out=8, k=4, stride=2, pad=1.
    N, Cin, H, W, Cout, K = 2, 4, 16, 16, 8, 4
    x = jax.random.normal(k1, (N, Cin, H, W), jnp.float32)
    w = jax.random.normal(k2, (Cin, Cout, K, K), jnp.float32)   # randn init
    b = jnp.zeros((Cout,), jnp.float32)                         # zeros init
    run_and_check(x, w, b, stride=2, padding=1)

    # Second config: K=3 -> odd output size, exercises phase cropping and
    # unequal per-phase tap counts, plus a non-zero bias.
    K2 = 3
    x2 = jax.random.normal(k3, (N, Cin, H, W), jnp.float32)
    w2 = jax.random.normal(k4, (Cin, Cout, K2, K2), jnp.float32)
    b2 = 0.1 * jax.random.normal(k5, (Cout,), jnp.float32)
    run_and_check(x2, w2, b2, stride=2, padding=1)

    print("KERNEL_OK")
</pallas_src>

<mosaic_0001>
module attributes {stable_mosaic.version = 11 : i64} {
  func.func @_gemm_kernel(%arg0: i32, %arg1: i32, %arg2: memref<1x256x40xf32, #tpu.memory_space<vmem>>, %arg3: memref<40x32xf32, #tpu.memory_space<vmem>>, %arg4: memref<1x256x32xf32, #tpu.memory_space<vmem>>) attributes {dimension_semantics = [#tpu.dimension_semantics<parallel>, #tpu.dimension_semantics<parallel>], iteration_bounds = array<i64: 2, 1>, scalar_prefetch = 0 : i64, scratch_operands = 0 : i64, tpu.core_type = #tpu.core_type<tc>, window_params = [{transform_indices = @transform_0, window_bounds = array<i64: 1, 256, 40>}, {pipeline_mode = #tpu.pipeline_mode<synchronous>, transform_indices = @transform_1, window_bounds = array<i64: 40, 32>}, {transform_indices = @transform_2, window_bounds = array<i64: 1, 256, 32>}]} {
    %c0 = arith.constant 0 : index
    %c0_0 = arith.constant 0 : index
    %c0_1 = arith.constant 0 : index
    %0 = vector.load %arg2[%c0, %c0_0, %c0_1] : memref<1x256x40xf32, #tpu.memory_space<vmem>>, vector<1x256x40xf32>
    %1 = vector.shape_cast %0 : vector<1x256x40xf32> to vector<256x40xf32>
    %c0_2 = arith.constant 0 : index
    %c0_3 = arith.constant 0 : index
    %2 = vector.load %arg3[%c0_2, %c0_3] : memref<40x32xf32, #tpu.memory_space<vmem>>, vector<40x32xf32>
    %cst = arith.constant dense<0.000000e+00> : vector<256x32xf32>
    %3 = tpu.matmul %1, %2, %cst {dimension_numbers = #tpu.dot_dimension_numbers<[1], [0], [0], [1], [0, 0, 1, 1], [], []>} : vector<256x40xf32>, vector<40x32xf32>, vector<256x32xf32> -> vector<256x32xf32>
    %c0_4 = arith.constant 0 : index
    %c0_5 = arith.constant 0 : index
    %c0_6 = arith.constant 0 : index
    %4 = vector.load %arg4[%c0_4, %c0_5, %c0_6] : memref<1x256x32xf32, #tpu.memory_space<vmem>>, vector<1x256x32xf32>
    %5 = vector.shape_cast %4 : vector<1x256x32xf32> to vector<256x32xf32>
    %6 = vector.shape_cast %3 : vector<256x32xf32> to vector<1x256x32xf32>
    tpu.vector_store %arg4[%c0_4, %c0_5, %c0_6], %6 {strides = array<i32>} : memref<1x256x32xf32, #tpu.memory_space<vmem>>, vector<1x256x32xf32>,
    return
  }
  func.func @transform_0(%arg0: i32, %arg1: i32) -> (i32, i32, i32) {
    %c0_i32 = arith.constant 0 : i32
    %c0_i32_0 = arith.constant 0 : i32
    return %arg0, %arg1, %c0_i32 : i32, i32, i32
  }
  func.func @transform_1(%arg0: i32, %arg1: i32) -> (i32, i32) {
    %c0_i32 = arith.constant 0 : i32
    %c0_i32_0 = arith.constant 0 : i32
    %c0_i32_1 = arith.constant 0 : i32
    return %c0_i32, %c0_i32_0 : i32, i32
  }
  func.func @transform_2(%arg0: i32, %arg1: i32) -> (i32, i32, i32) {
    %c0_i32 = arith.constant 0 : i32
    %c0_i32_0 = arith.constant 0 : i32
    return %arg0, %arg1, %c0_i32 : i32, i32, i32
  }
}

</mosaic_0001>

<bundles_post_ra>
// kernel: tpu_custom_call.1
= control target key start
LH: loop header
LB: loop body
LE: loop exit
PB: predicated region body
PF: predicated region fallthrough
CT: control target
= control target key end

     0   :  { %s879_s9 = smov 0   ;;  %s881_s10 = smov 0   ;;  %s1066_s0 = inlined_call_operand.vmem [shape: f32[2,256,40], index: 0, kind: input, shape index: {}]   ;;  %s1067_s1 = inlined_call_operand.vmem [shape: f32[40,32], index: 1, kind: input, shape index: {}]   ;;  %s1068_s2 = inlined_call_operand.vmem [shape: f32[2,256,32], index: 2, kind: output, shape index: {}]  }
   0x1   :  { %s883_s11 = smov 0  }
   0x2 LB: > { %s24_s12 = sadd.s32 1, %s858_s10  ;;  %p666_p0 = scmp.ge.s32.totalorder %s862_s11, 1  ;;  %s862_s11 = sphi %s883_s11, %s12_s11   ;;  %s858_s10 = sphi %s881_s10, %s1070_s10   ;;  %s854_s9 = sphi %s879_s9, %s1069_s9  }
   0x3   : > { %p26_p1 = scmp.ge.s32.totalorder %s24_s12, 2  ;;  %p133_p2 = scmp.lt.s32.totalorder %s862_s11, 3 }
   0x5   : > { %s1072_s12 = smov (%p26_p1, %s24_s12), 0  ;;  %p134_p3 = pnand %p666_p0, %p133_p2 }
   0x6   : > { %v215_v0 = vld [vmem:[%s1067_s1] sm:$0xff] (!%p134_p3)  ;;  %v216_v1 = vld [vmem:[%s1067_s1 + $0x8] sm:$0xff] (!%p134_p3)  ;;  %v217_v2 = vld [vmem:[%s1067_s1 + $0x10] sm:$0xff] (!%p134_p3)  ;;  %p164_p4 = scmp.lt.s32.totalorder (!%p134_p3), %s854_s9, 1  ;;  %vm220_vm0 = vcmask (!%p134_p3), 326656   ;;  %vm542_vm1 = vcmask (!%p134_p3), 261120  }
   0x7   : > { %137 = sbr.rel (%p134_p3) target bundleno = 262 (0x106), region = 28  ;;  %v802_v3 = vpack.c.bf16 (!%p134_p3), %v216_v1, %v215_v0  ;;  %v218_v4 = vld [vmem:[%s1067_s1 + $0x18] sm:$0xff] (!%p134_p3)  ;;  %v219_v6 = vld [vmem:[%s1067_s1 + $0x20] sm:$0xff] (!%p134_p3) }
   0x8   : > { %v806_v5 = vpack.c.bf16 (!%p134_p3), %v218_v4, %v217_v2 }
   0x9   : > { %803 = vmatprep.subr.bf16.mxu0 (!%p134_p3), %v802_v3  ;;  %810 = vmatprep.subr.bf16.mxu1 (!%p134_p3), %v802_v3 }
   0xa   : > { %805 = vmatpush3.bf16.msra.mxu0 (!%p134_p3), %v802_v3  ;;  %813 = vmatpush3.bf16.msra.mxu1 (!%p134_p3), %v802_v3 }
   0xb   : > { %807 = vmatprep.subr.bf16.mxu0 (!%p134_p3), %v806_v5  ;;  %811 = vmatprep.subr.bf16.mxu1 (!%p134_p3), %v806_v5 }
   0xe   : > { %s1074_s9 = smov (!%p164_p4, %s854_s9), 1  ;;  %809 = vmatpush3.bf16.msra.mxu0 %v806_v5  ;;  %814 = vmatpush3.bf16.msra.mxu1 %v806_v5 }
   0xf   : > { %s705_s21 = sshll.u32 %s1074_s9, 8  ;;  %752 = vmatprep.subr.mxu0 %v219_v6  ;;  %812 = vmatprep.subr.mxu1 %v219_v6 }
  0x10   : > { %s917_s24 = scalar_lea.vmem %s1066_s0, %s705_s21  ;;  %s991_s29 = scalar_lea.vmem %s1068_s2, %s705_s21 }
  0x11   : > { %v183_v7 = vld [vmem:[%s917_s24] sm:$0xff]  ;;  %v184_v9 = vld [vmem:[%s917_s24 + $0x8] sm:$0xff]  ;;  %v185_v11 = vld [vmem:[%s917_s24 + $0x10] sm:$0xff] }
  0x12   : > { %v199_v8 = vld [vmem:[%s917_s24 + $0x80] sm:$0xff]  ;;  %754 = vmatprep.mubr.msk.f32.mxu0 %vm220_vm0, %v183_v7  ;;  %v200_v10 = vld [vmem:[%s917_s24 + $0x88] sm:$0xff]  ;;  %v201_v12 = vld [vmem:[%s917_s24 + $0x90] sm:$0xff]  ;;  %753 = vmatpush3.msra.mxu0 %v219_v6 }
  0x13   : > { %778 = vmatprep.mubr.msk.f32.mxu1 %vm220_vm0, %v199_v8  ;;  %815 = vmatpush3.msra.mxu1 %v219_v6  ;;  %v186_v13 = vld [vmem:[%s917_s24 + $0x18] sm:$0xff]  ;;  %v187_v15 = vld [vmem:[%s917_s24 + $0x20] sm:$0xff]  ;;  %v188_v17 = vld [vmem:[%s917_s24 + $0x28] sm:$0xff] }
  0x14   : > { %755 = vmatmul.mubr.msk.f32.vlgmr.msra.gmra.mrb[0].mxu0 %vm220_vm0, %v184_v9  ;;  %779 = vmatmul.mubr.msk.f32.vlgmr.msra.gmra.mrb[0].mxu1 %vm220_vm0, %v200_v10  ;;  %v202_v14 = vld [vmem:[%s917_s24 + $0x98] sm:$0xff]  ;;  %v203_v16 = vld [vmem:[%s917_s24 + $0xa0] sm:$0xff]  ;;  %v204_v18 = vld [vmem:[%s917_s24 + $0xa8] sm:$0xff] }
  0x15   : > { %757 = vmatprep.mubr.msk.f32.mxu0 %vm220_vm0, %v185_v11  ;;  %781 = vmatprep.mubr.msk.f32.mxu1 %vm220_vm0, %v201_v12  ;;  %v189_v19 = vld [vmem:[%s917_s24 + $0x30] sm:$0xff]  ;;  %v190_v21 = vld [vmem:[%s917_s24 + $0x38] sm:$0xff]  ;;  %v191_v23 = vld [vmem:[%s917_s24 + $0x40] sm:$0xff] }
  0x16   : > { %v205_v20 = vld [vmem:[%s917_s24 + $0xb0] sm:$0xff]  ;;  %v206_v22 = vld [vmem:[%s917_s24 + $0xb8] sm:$0xff]  ;;  %v207_v24 = vld [vmem:[%s917_s24 + $0xc0] sm:$0xff] }
  0x17   : > { %v192_v25 = vld [vmem:[%s917_s24 + $0x48] sm:$0xff]  ;;  %v193_v27 = vld [vmem:[%s917_s24 + $0x50] sm:$0xff]  ;;  %v194_v29 = vld [vmem:[%s917_s24 + $0x58] sm:$0xff] }
  0x18   : > { %758 = vmatmul.mubr.msk.f32.gmra.mrb[2].mxu0 %vm220_vm0, %v186_v13  ;;  %782 = vmatmul.mubr.msk.f32.gmra.mrb[2].mxu1 %vm220_vm0, %v202_v14  ;;  %v208_v26 = vld [vmem:[%s917_s24 + $0xc8] sm:$0xff]  ;;  %v209_v28 = vld [vmem:[%s917_s24 + $0xd0] sm:$0xff]  ;;  %v210_v30 = vld [vmem:[%s917_s24 + $0xd8] sm:$0xff] }
  0x19   : > { %760 = vmatprep.mubr.msk.f32.mxu0 %vm220_vm0, %v187_v15  ;;  %784 = vmatprep.mubr.msk.f32.mxu1 %vm220_vm0, %v203_v16  ;;  %v195_v31 = vld [vmem:[%s917_s24 + $0x60] sm:$0xff]  ;;  %v196_v33 = vld [vmem:[%s917_s24 + $0x68] sm:$0xff]  ;;  %v197_v35 = vld [vmem:[%s917_s24 + $0x70] sm:$0xff] }
  0x1a   : > { %v211_v32 = vld [vmem:[%s917_s24 + $0xe0] sm:$0xff]  ;;  %v212_v34 = vld [vmem:[%s917_s24 + $0xe8] sm:$0xff]  ;;  %v213_v36 = vld [vmem:[%s917_s24 + $0xf0] sm:$0xff] }
  0x1b   : > { %v198_v37 = vld [vmem:[%s917_s24 + $0x78] sm:$0xff] }
  0x1c   : > { %761 = vmatmul.mubr.msk.f32.gmra.mrb[4].mxu0 %vm220_vm0, %v188_v17  ;;  %785 = vmatmul.mubr.msk.f32.gmra.mrb[4].mxu1 %vm220_vm0, %v204_v18  ;;  %v214_v38 = vld [vmem:[%s917_s24 + $0xf8] sm:$0xff] }
  0x1d   : > { %763 = vmatprep.mubr.msk.f32.mxu0 %vm220_vm0, %v189_v19  ;;  %787 = vmatprep.mubr.msk.f32.mxu1 %vm220_vm0, %v205_v20 }
  0x20   : > { %764 = vmatmul.mubr.msk.f32.gmra.mrb[6].mxu0 %vm220_vm0, %v190_v21  ;;  %788 = vmatmul.mubr.msk.f32.gmra.mrb[6].mxu1 %vm220_vm0, %v206_v22 }
  0x21   : > { %766 = vmatprep.mubr.msk.f32.mxu0 %vm220_vm0, %v191_v23  ;;  %790 = vmatprep.mubr.msk.f32.mxu1 %vm220_vm0, %v207_v24 }
  0x24   : > { %767 = vmatmul.mubr.msk.f32.gmra.mrb[8].mxu0 %vm220_vm0, %v192_v25  ;;  %791 = vmatmul.mubr.msk.f32.gmra.mrb[8].mxu1 %vm220_vm0, %v208_v26 }
  0x25   : > { %769 = vmatprep.mubr.msk.f32.mxu0 %vm220_vm0, %v193_v27  ;;  %793 = vmatprep.mubr.msk.f32.mxu1 %vm220_vm0, %v209_v28 }
  0x28   : > { %770 = vmatmul.mubr.msk.f32.gmra.mrb[10].mxu0 %vm220_vm0, %v194_v29  ;;  %794 = vmatmul.mubr.msk.f32.gmra.mrb[10].mxu1 %vm220_vm0, %v210_v30 }
  0x29   : > { %772 = vmatprep.mubr.msk.f32.mxu0 %vm220_vm0, %v195_v31  ;;  %796 = vmatprep.mubr.msk.f32.mxu1 %vm220_vm0, %v211_v32 }
  0x2c   : > { %773 = vmatmul.mubr.msk.f32.gmra.mrb[12].mxu0 %vm220_vm0, %v196_v33  ;;  %797 = vmatmul.mubr.msk.f32.gmra.mrb[12].mxu1 %vm220_vm0, %v212_v34 }
  0x2d   : > { %775 = vmatprep.mubr.msk.f32.mxu0 %vm220_vm0, %v197_v35  ;;  %799 = vmatprep.mubr.msk.f32.mxu1 %vm220_vm0, %v213_v36 }
  0x30   : > { %776 = vmatmul.mubr.msk.f32.gmra.mrb[14].mxu0 %vm220_vm0, %v198_v37  ;;  %800 = vmatmul.mubr.msk.f32.gmra.mrb[14].mxu1 %vm220_vm0, %v214_v38 }
  0xe7   : > { %v756_v39 = vpop.f32.mrb[0].mxu0  ;;  %v780_v40 = vpop.f32.mrb[0].mxu1 }
  0xe8   : > { %544 = vst.msk [vmem:[%s991_s29 + $0x8] sm:$0xff] %vm542_vm1, %v756_v39  ;;  %560 = vst.msk [vmem:[%s991_s29 + $0x88] sm:$0xff] %vm542_vm1, %v780_v40  ;;  %v383_v41 = vpop.f32.mrb[1].mxu0  ;;  %v463_v42 = vpop.f32.mrb[1].mxu1 }
  0xe9   : > { %543 = vst.msk [vmem:[%s991_s29] sm:$0xff] %vm542_vm1, %v383_v41  ;;  %559 = vst.msk [vmem:[%s991_s29 + $0x80] sm:$0xff] %vm542_vm1, %v463_v42 }
  0xeb   : > { %v759_v43 = vpop.f32.mrb[2].mxu0  ;;  %v783_v44 = vpop.f32.mrb[2].mxu1 }
  0xec   : > { %546 = vst.msk [vmem:[%s991_s29 + $0x18] sm:$0xff] %vm542_vm1, %v759_v43  ;;  %562 = vst.msk [vmem:[%s991_s29 + $0x98] sm:$0xff] %vm542_vm1, %v783_v44  ;;  %v393_v45 = vpop.f32.mrb[3].mxu0  ;;  %v473_v46 = vpop.f32.mrb[3].mxu1 }
  0xed   : > { %545 = vst.msk [vmem:[%s991_s29 + $0x10] sm:$0xff] %vm542_vm1, %v393_v45  ;;  %561 = vst.msk [vmem:[%s991_s29 + $0x90] sm:$0xff] %vm542_vm1, %v473_v46 }
  0xef   : > { %v762_v47 = vpop.f32.mrb[4].mxu0  ;;  %v786_v48 = vpop.f32.mrb[4].mxu1 }
  0xf0   : > { %548 = vst.msk [vmem:[%s991_s29 + $0x28] sm:$0xff] %vm542_vm1, %v762_v47  ;;  %564 = vst.msk [vmem:[%s991_s29 + $0xa8] sm:$0xff] %vm542_vm1, %v786_v48  ;;  %v403_v49 = vpop.f32.mrb[5].mxu0  ;;  %v483_v50 = vpop.f32.mrb[5].mxu1 }
  0xf1   : > { %547 = vst.msk [vmem:[%s991_s29 + $0x20] sm:$0xff] %vm542_vm1, %v403_v49  ;;  %563 = vst.msk [vmem:[%s991_s29 + $0xa0] sm:$0xff] %vm542_vm1, %v483_v50 }
  0xf3   : > { %v765_v51 = vpop.f32.mrb[6].mxu0  ;;  %v789_v52 = vpop.f32.mrb[6].mxu1 }
  0xf4   : > { %550 = vst.msk [vmem:[%s991_s29 + $0x38] sm:$0xff] %vm542_vm1, %v765_v51  ;;  %566 = vst.msk [vmem:[%s991_s29 + $0xb8] sm:$0xff] %vm542_vm1, %v789_v52  ;;  %v413_v53 = vpop.f32.mrb[7].mxu0  ;;  %v493_v54 = vpop.f32.mrb[7].mxu1 }
  0xf5   : > { %549 = vst.msk [vmem:[%s991_s29 + $0x30] sm:$0xff] %vm542_vm1, %v413_v53  ;;  %565 = vst.msk [vmem:[%s991_s29 + $0xb0] sm:$0xff] %vm542_vm1, %v493_v54 }
  0xf7   : > { %v768_v55 = vpop.f32.mrb[8].mxu0  ;;  %v792_v56 = vpop.f32.mrb[8].mxu1 }
  0xf8   : > { %552 = vst.msk [vmem:[%s991_s29 + $0x48] sm:$0xff] %vm542_vm1, %v768_v55  ;;  %568 = vst.msk [vmem:[%s991_s29 + $0xc8] sm:$0xff] %vm542_vm1, %v792_v56  ;;  %v423_v57 = vpop.f32.mrb[9].mxu0  ;;  %v503_v58 = vpop.f32.mrb[9].mxu1 }
  0xf9   : > { %551 = vst.msk [vmem:[%s991_s29 + $0x40] sm:$0xff] %vm542_vm1, %v423_v57  ;;  %567 = vst.msk [vmem:[%s991_s29 + $0xc0] sm:$0xff] %vm542_vm1, %v503_v58 }
  0xfb   : > { %v771_v59 = vpop.f32.mrb[10].mxu0  ;;  %v795_v60 = vpop.f32.mrb[10].mxu1 }
  0xfc   : > { %554 = vst.msk [vmem:[%s991_s29 + $0x58] sm:$0xff] %vm542_vm1, %v771_v59  ;;  %570 = vst.msk [vmem:[%s991_s29 + $0xd8] sm:$0xff] %vm542_vm1, %v795_v60  ;;  %v433_v61 = vpop.f32.mrb[11].mxu0  ;;  %v513_v62 = vpop.f32.mrb[11].mxu1 }
  0xfd   : > { %553 = vst.msk [vmem:[%s991_s29 + $0x50] sm:$0xff] %vm542_vm1, %v433_v61  ;;  %569 = vst.msk [vmem:[%s991_s29 + $0xd0] sm:$0xff] %vm542_vm1, %v513_v62 }
  0xff   : > { %v774_v63 = vpop.f32.mrb[12].mxu0  ;;  %v798_v0 = vpop.f32.mrb[12].mxu1 }
 0x100   : > { %556 = vst.msk [vmem:[%s991_s29 + $0x68] sm:$0xff] %vm542_vm1, %v774_v63  ;;  %572 = vst.msk [vmem:[%s991_s29 + $0xe8] sm:$0xff] %vm542_vm1, %v798_v0  ;;  %v443_v1 = vpop.f32.mrb[13].mxu0  ;;  %v523_v2 = vpop.f32.mrb[13].mxu1 }
 0x101   : > { %555 = vst.msk [vmem:[%s991_s29 + $0x60] sm:$0xff] %vm542_vm1, %v443_v1  ;;  %571 = vst.msk [vmem:[%s991_s29 + $0xe0] sm:$0xff] %vm542_vm1, %v523_v2 }
 0x103   : > { %v777_v3 = vpop.f32.mrb[14].mxu0  ;;  %v801_v4 = vpop.f32.mrb[14].mxu1 }
 0x104   : > { %558 = vst.msk [vmem:[%s991_s29 + $0x78] sm:$0xff] %vm542_vm1, %v777_v3  ;;  %574 = vst.msk [vmem:[%s991_s29 + $0xf8] sm:$0xff] %vm542_vm1, %v801_v4  ;;  %v453_v5 = vpop.f32.mrb[15].mxu0  ;;  %v533_v6 = vpop.f32.mrb[15].mxu1 }
 0x105   : > { %557 = vst.msk [vmem:[%s991_s29 + $0x70] sm:$0xff] %vm542_vm1, %v453_v5  ;;  %573 = vst.msk [vmem:[%s991_s29 + $0xf0] sm:$0xff] %vm542_vm1, %v533_v6 }
 0x106 PF: > { %s12_s11 = sadd.s32 1, %s862_s11   ;;  %s1069_s9 = smov %s858_s10 }
 0x107   : > { %p9_p5 = scmp.ge.s32.totalorder %s12_s11, 4   ;;  %s1070_s10 = smov %s1072_s12 }
 0x109   :  { %11 = sbr.rel (!%p9_p5) target bundleno = 2 (0x2), region = 58 }

</bundles_post_ra>
